<compile_context>
chip_gen: v7x
topology: tpu7x:2x2x1
jax: 0.10.0
libtpu: 0.0.40
codegen_flags: <defaults>
</compile_context>

<pallas_src>
import jax
import jax.numpy as jnp
from jax import lax
from jax.experimental import pallas as pl
from jax.experimental.pallas import tpu as pltpu

# ----------------------------- config --------------------------------------
TEMPERATURE = 1.0       # config.temperature
IMAGE_EMBEDDING = 64    # config.image_embedding (image encoder feature dim)
TEXT_EMBEDDING = 48     # config.text_embedding  (text encoder feature dim)
PROJECTION_DIM = 32     # ProjectionHead projection_dim
PATCH = 4
LN_EPS = 1e-5           # nn.LayerNorm default eps
_INV_SQRT2 = 0.7071067811865476

# parameter-slab row layout (lane-padded to 128)
_SLAB_ROWS = 16
_ROW_CONV_B = 0          # lanes [0:IMAGE_EMBEDDING]
_ROW_IMG = 1             # rows 1..4: image head b1, b2, gamma, beta  (lanes [0:PROJECTION_DIM])
_ROW_TXT = 5             # rows 5..8: text  head b1, b2, gamma, beta  (lanes [0:PROJECTION_DIM])


# ----------------------------- fused kernel --------------------------------
def _clip_forward_kernel(patch_ref, ids_ref, mask_ref, conv_w_ref, tok_ref,
                         img_w1_ref, img_w2_ref, txt_w1_ref, txt_w2_ref,
                         slab_ref, out_ref):
    # patch_ref : (B, NP, K) f32       conv_w_ref : (K, D_img)
    # ids_ref   : (B, S) int32         tok_ref    : (V, D_txt)
    # mask_ref  : (B, S) int32         *_w1/_w2   : projection-head weights
    # slab_ref  : (16, 128) f32 packed biases/scales
    # out_ref   : (1, 1) f32 in SMEM (scalar loss)
    B, S = ids_ref.shape
    V = tok_ref.shape[0]

    slab = slab_ref[...]
    conv_b = slab[_ROW_CONV_B:_ROW_CONV_B + 1, :IMAGE_EMBEDDING]        # (1, D_img)
    img_b1 = slab[_ROW_IMG + 0:_ROW_IMG + 1, :PROJECTION_DIM]
    img_b2 = slab[_ROW_IMG + 1:_ROW_IMG + 2, :PROJECTION_DIM]
    img_g = slab[_ROW_IMG + 2:_ROW_IMG + 3, :PROJECTION_DIM]
    img_bt = slab[_ROW_IMG + 3:_ROW_IMG + 4, :PROJECTION_DIM]
    txt_b1 = slab[_ROW_TXT + 0:_ROW_TXT + 1, :PROJECTION_DIM]
    txt_b2 = slab[_ROW_TXT + 1:_ROW_TXT + 2, :PROJECTION_DIM]
    txt_g = slab[_ROW_TXT + 2:_ROW_TXT + 3, :PROJECTION_DIM]
    txt_bt = slab[_ROW_TXT + 3:_ROW_TXT + 4, :PROJECTION_DIM]

    # ---- image encoder: stride-P patch conv + global mean pool ------------
    # A patch conv is a per-patch linear map; mean pooling commutes with it,
    # so pool the patches first and do a single MXU matmul.
    # TODO(synk): reference ImageEncoder is a pretrained ResNet50; this is a
    # synthetic patch-conv stand-in with the same (B, image_embedding) output.
    pooled = jnp.mean(patch_ref[...], axis=1)                            # (B, K)
    image_features = (
        jnp.dot(pooled, conv_w_ref[...], preferred_element_type=jnp.float32)
        + conv_b
    )                                                                     # (B, D_img)

    # ---- text encoder: in-kernel gather + masked mean pool ----------------
    # Masked mean of gathered embeddings == (mask-weighted one-hot counts) @
    # table / mask-count, so the gather becomes a tiny MXU matmul in VMEM.
    # TODO(synk): reference TextEncoder is DistilBERT's CLS state; a masked
    # mean-pool over token embeddings stands in.
    ids = ids_ref[...]                                                    # (B, S) i32
    mask = mask_ref[...].astype(jnp.float32)                              # (B, S)
    vocab_iota = lax.broadcasted_iota(jnp.int32, (B, S, V), 2)
    onehot = (ids[:, :, None] == vocab_iota).astype(jnp.float32)
    counts = jnp.sum(onehot * mask[:, :, None], axis=1)                   # (B, V)
    summed = jnp.dot(counts, tok_ref[...], preferred_element_type=jnp.float32)
    denom = jnp.maximum(jnp.sum(mask, axis=1, keepdims=True), 1.0)        # no NaN on empty rows
    text_features = summed / denom                                        # (B, D_txt)

    # ---- ProjectionHead: Linear -> GELU -> Linear -> (+res) -> LayerNorm --
    def proj_head(x, w1, b1, w2, b2, gamma, beta):
        projected = jnp.dot(x, w1, preferred_element_type=jnp.float32) + b1
        # exact (erf-based) GELU, matching nn.GELU() default
        h = 0.5 * projected * (1.0 + lax.erf(projected * _INV_SQRT2))
        h = jnp.dot(h, w2, preferred_element_type=jnp.float32) + b2
        y = h + projected                          # dropout = identity (eval)
        mean = jnp.mean(y, axis=-1, keepdims=True)
        var = jnp.mean((y - mean) ** 2, axis=-1, keepdims=True)
        return (y - mean) * lax.rsqrt(var + LN_EPS) * gamma + beta

    img_emb = proj_head(image_features, img_w1_ref[...], img_b1,
                        img_w2_ref[...], img_b2, img_g, img_bt)           # (B, P)
    txt_emb = proj_head(text_features, txt_w1_ref[...], txt_b1,
                        txt_w2_ref[...], txt_b2, txt_g, txt_bt)           # (B, P)

    # ---- CLIP loss (transpose-free) ----------------------------------------
    inv_t = jnp.float32(1.0 / TEMPERATURE)
    dn = (((1,), (1,)), ((), ()))   # contract last dims: A @ B.T without .T
    logits = lax.dot_general(txt_emb, img_emb, dn,
                             preferred_element_type=jnp.float32) * inv_t  # (B, B)
    img_sim = lax.dot_general(img_emb, img_emb, dn,
                              preferred_element_type=jnp.float32)
    txt_sim = lax.dot_general(txt_emb, txt_emb, dn,
                              preferred_element_type=jnp.float32)

    # targets = softmax((img_sim + txt_sim) / (2*T), dim=1)
    t = (img_sim + txt_sim) * (0.5 * inv_t)
    t = t - jnp.max(t, axis=1, keepdims=True)
    e = jnp.exp(t)
    targets = e / jnp.sum(e, axis=1, keepdims=True)

    # log-softmax over rows (for texts_loss) and over columns (for images_loss,
    # i.e. cross_entropy(logits.T, targets.T)) -- no transposes materialized.
    lr = logits - jnp.max(logits, axis=1, keepdims=True)
    lsm_rows = lr - jnp.log(jnp.sum(jnp.exp(lr), axis=1, keepdims=True))
    lc = logits - jnp.max(logits, axis=0, keepdims=True)
    lsm_cols = lc - jnp.log(jnp.sum(jnp.exp(lc), axis=0, keepdims=True))

    # loss.mean() == -(sum targets*lsm_rows + sum targets*lsm_cols) / (2*B)
    total = jnp.sum(targets * (lsm_rows + lsm_cols))
    out_ref[0, 0] = -total / jnp.float32(2 * B)


# ----------------------------- wrapper --------------------------------------
def _pack_param_slab(params):
    """Pack all tiny (1, D) parameters into one (16, 128) f32 slab."""
    slab = jnp.zeros((_SLAB_ROWS, 128), jnp.float32)
    slab = slab.at[_ROW_CONV_B, :IMAGE_EMBEDDING].set(params["conv_b"].reshape(-1))
    ip, tp = params["image_proj"], params["text_proj"]
    rows = [ip["b1"], ip["b2"], ip["gamma"], ip["beta"],
            tp["b1"], tp["b2"], tp["gamma"], tp["beta"]]
    for r, v in enumerate(rows, start=_ROW_IMG):
        slab = slab.at[r, :PROJECTION_DIM].set(v.reshape(-1))
    return slab


def patchify_nchw(images, patch):
    """(B, C, H, W) NCHW -> (B, NP, C*patch*patch); flatten order matches
    PyTorch conv weight layout (C, p, p)."""
    B, C, H, W = images.shape
    x = images.reshape(B, C, H // patch, patch, W // patch, patch)
    x = x.transpose(0, 2, 4, 1, 3, 5)
    return x.reshape(B, (H // patch) * (W // patch), C * patch * patch)


def clip_forward(params, batch):
    patches = patchify_nchw(batch["image"], PATCH).astype(jnp.float32)
    slab = _pack_param_slab(params)
    args = (
        patches,
        batch["input_ids"].astype(jnp.int32),
        batch["attention_mask"].astype(jnp.int32),
        params["conv_w"],
        params["token_emb"],
        params["image_proj"]["w1"], params["image_proj"]["w2"],
        params["text_proj"]["w1"], params["text_proj"]["w2"],
        slab,
    )

    B, NP, K = patches.shape
    S = batch["input_ids"].shape[1]
    V = params["token_emb"].shape[0]
    flops = 2 * B * (
        NP * K + K * IMAGE_EMBEDDING              # pool + patch-conv matmul
        + S * V + V * TEXT_EMBEDDING              # one-hot + gather matmul
        + (IMAGE_EMBEDDING + TEXT_EMBEDDING + 2 * PROJECTION_DIM) * PROJECTION_DIM
        + 3 * B * PROJECTION_DIM                  # loss similarity matmuls
    )
    transcendentals = B * (2 * PROJECTION_DIM + 6 * B)
    bytes_accessed = sum(int(a.size) * a.dtype.itemsize for a in args) + 4

    vmem = pltpu.MemorySpace.VMEM
    out = pl.pallas_call(
        _clip_forward_kernel,
        out_shape=jax.ShapeDtypeStruct((1, 1), jnp.float32),
        in_specs=[pl.BlockSpec(memory_space=vmem) for _ in args],
        out_specs=pl.BlockSpec(memory_space=pltpu.MemorySpace.SMEM),
        cost_estimate=pl.CostEstimate(flops=flops,
                                      transcendentals=transcendentals,
                                      bytes_accessed=bytes_accessed),
    )(*args)
    return out[0, 0]


# ----------------------------- params ---------------------------------------
def init_params(key, in_channels, vocab_size):
    ks = jax.random.split(key, 4)

    def w(k, shape, scale=0.02):
        return (scale * jax.random.normal(k, shape)).astype(jnp.float32)

    def proj_head(k, embedding_dim):
        k1, k2 = jax.random.split(k)
        return {
            "w1": w(k1, (embedding_dim, PROJECTION_DIM)),
            "b1": jnp.zeros((1, PROJECTION_DIM), jnp.float32),
            "w2": w(k2, (PROJECTION_DIM, PROJECTION_DIM)),
            "b2": jnp.zeros((1, PROJECTION_DIM), jnp.float32),
            "gamma": jnp.ones((1, PROJECTION_DIM), jnp.float32),
            "beta": jnp.zeros((1, PROJECTION_DIM), jnp.float32),
        }

    K = in_channels * PATCH * PATCH
    return {
        "conv_w": w(ks[0], (K, IMAGE_EMBEDDING)),
        "conv_b": jnp.zeros((1, IMAGE_EMBEDDING), jnp.float32),
        "token_emb": w(ks[1], (vocab_size, TEXT_EMBEDDING)),
        "image_proj": proj_head(ks[2], IMAGE_EMBEDDING),
        "text_proj": proj_head(ks[3], TEXT_EMBEDDING),
    }


# ----------------------------- main ------------------------------------------
if __name__ == "__main__":
    B, C, H, W = 4, 3, 16, 16
    S, V = 8, 32

    key = jax.random.PRNGKey(0)
    k_img, k_ids, k_params = jax.random.split(key, 3)

    image = jax.random.normal(k_img, (B, C, H, W), jnp.float32)
    input_ids = jax.random.randint(k_ids, (B, S), 0, V, dtype=jnp.int32)
    attention_mask = jnp.ones((B, S), jnp.int32).at[:, 6:].set(0)  # pad last 2 tokens

    params = init_params(k_params, C, V)
    batch = {"image": image, "input_ids": input_ids, "attention_mask": attention_mask}

    loss = clip_forward(params, batch)
    jax.block_until_ready(loss)
    assert loss.shape == () and jnp.isfinite(loss)
    print("KERNEL_OK")
</pallas_src>

<mosaic_0001>
module attributes {stable_mosaic.version = 11 : i64} {
  func.func @_clip_forward_kernel(%arg0: memref<4x16x48xf32, #tpu.memory_space<vmem>>, %arg1: memref<4x8xi32, #tpu.memory_space<vmem>>, %arg2: memref<4x8xi32, #tpu.memory_space<vmem>>, %arg3: memref<48x64xf32, #tpu.memory_space<vmem>>, %arg4: memref<32x48xf32, #tpu.memory_space<vmem>>, %arg5: memref<64x32xf32, #tpu.memory_space<vmem>>, %arg6: memref<32x32xf32, #tpu.memory_space<vmem>>, %arg7: memref<48x32xf32, #tpu.memory_space<vmem>>, %arg8: memref<32x32xf32, #tpu.memory_space<vmem>>, %arg9: memref<16x128xf32, #tpu.memory_space<vmem>>, %arg10: memref<1x1xf32, #tpu.memory_space<smem>>) attributes {dimension_semantics = [], scalar_prefetch = 0 : i64, scratch_operands = 0 : i64, tpu.core_type = #tpu.core_type<tc>} {
    %c0 = arith.constant 0 : index
    %c0_0 = arith.constant 0 : index
    %0 = vector.load %arg9[%c0, %c0_0] : memref<16x128xf32, #tpu.memory_space<vmem>>, vector<16x128xf32>
    %1 = vector.extract_strided_slice %0 {offsets = [0, 0], sizes = [1, 64], strides = [1, 1]} : vector<16x128xf32> to vector<1x64xf32>
    %2 = vector.extract_strided_slice %0 {offsets = [1, 0], sizes = [1, 32], strides = [1, 1]} : vector<16x128xf32> to vector<1x32xf32>
    %3 = vector.extract_strided_slice %0 {offsets = [2, 0], sizes = [1, 32], strides = [1, 1]} : vector<16x128xf32> to vector<1x32xf32>
    %4 = vector.extract_strided_slice %0 {offsets = [3, 0], sizes = [1, 32], strides = [1, 1]} : vector<16x128xf32> to vector<1x32xf32>
    %5 = vector.extract_strided_slice %0 {offsets = [4, 0], sizes = [1, 32], strides = [1, 1]} : vector<16x128xf32> to vector<1x32xf32>
    %6 = vector.extract_strided_slice %0 {offsets = [5, 0], sizes = [1, 32], strides = [1, 1]} : vector<16x128xf32> to vector<1x32xf32>
    %7 = vector.extract_strided_slice %0 {offsets = [6, 0], sizes = [1, 32], strides = [1, 1]} : vector<16x128xf32> to vector<1x32xf32>
    %8 = vector.extract_strided_slice %0 {offsets = [7, 0], sizes = [1, 32], strides = [1, 1]} : vector<16x128xf32> to vector<1x32xf32>
    %9 = vector.extract_strided_slice %0 {offsets = [8, 0], sizes = [1, 32], strides = [1, 1]} : vector<16x128xf32> to vector<1x32xf32>
    %c0_1 = arith.constant 0 : index
    %c0_2 = arith.constant 0 : index
    %c0_3 = arith.constant 0 : index
    %10 = vector.load %arg0[%c0_1, %c0_2, %c0_3] : memref<4x16x48xf32, #tpu.memory_space<vmem>>, vector<4x16x48xf32>
    %cst = arith.constant dense<0.000000e+00> : vector<4x48xf32>
    %11 = vector.multi_reduction <add>, %10, %cst [1] : vector<4x16x48xf32> to vector<4x48xf32>
    %cst_4 = arith.constant 1.600000e+01 : f32
    %12 = vector.broadcast %cst_4 : f32 to vector<4x48xf32>
    %13 = arith.divf %11, %12 : vector<4x48xf32>
    %c0_5 = arith.constant 0 : index
    %c0_6 = arith.constant 0 : index
    %14 = vector.load %arg3[%c0_5, %c0_6] : memref<48x64xf32, #tpu.memory_space<vmem>>, vector<48x64xf32>
    %cst_7 = arith.constant dense<0.000000e+00> : vector<4x64xf32>
    %15 = tpu.matmul %13, %14, %cst_7 {dimension_numbers = #tpu.dot_dimension_numbers<[1], [0], [0], [1], [0, 0, 1, 1], [], []>} : vector<4x48xf32>, vector<48x64xf32>, vector<4x64xf32> -> vector<4x64xf32>
    %16 = vector.broadcast %1 : vector<1x64xf32> to vector<4x64xf32>
    %17 = arith.addf %15, %16 : vector<4x64xf32>
    %c0_8 = arith.constant 0 : index
    %c0_9 = arith.constant 0 : index
    %18 = vector.load %arg1[%c0_8, %c0_9] : memref<4x8xi32, #tpu.memory_space<vmem>>, vector<4x8xi32>
    %c0_10 = arith.constant 0 : index
    %c0_11 = arith.constant 0 : index
    %19 = vector.load %arg2[%c0_10, %c0_11] : memref<4x8xi32, #tpu.memory_space<vmem>>, vector<4x8xi32>
    %20 = arith.sitofp %19 : vector<4x8xi32> to vector<4x8xf32>
    %21 = tpu.iota {dimensions = array<i32: 2>} : vector<4x8x32xi32>
    %22 = vector.shape_cast %18 : vector<4x8xi32> to vector<4x8x1xi32>
    %23 = vector.broadcast %22 : vector<4x8x1xi32> to vector<4x8x32xi32>
    %24 = arith.cmpi eq, %23, %21 : vector<4x8x32xi32>
    %25 = arith.extui %24 : vector<4x8x32xi1> to vector<4x8x32xi32>
    %26 = arith.sitofp %25 : vector<4x8x32xi32> to vector<4x8x32xf32>
    %27 = vector.shape_cast %20 : vector<4x8xf32> to vector<4x8x1xf32>
    %28 = vector.broadcast %27 : vector<4x8x1xf32> to vector<4x8x32xf32>
    %29 = arith.mulf %26, %28 : vector<4x8x32xf32>
    %cst_12 = arith.constant dense<0.000000e+00> : vector<4x32xf32>
    %30 = vector.multi_reduction <add>, %29, %cst_12 [1] : vector<4x8x32xf32> to vector<4x32xf32>
    %c0_13 = arith.constant 0 : index
    %c0_14 = arith.constant 0 : index
    %31 = vector.load %arg4[%c0_13, %c0_14] : memref<32x48xf32, #tpu.memory_space<vmem>>, vector<32x48xf32>
    %cst_15 = arith.constant dense<0.000000e+00> : vector<4x48xf32>
    %32 = tpu.matmul %30, %31, %cst_15 {dimension_numbers = #tpu.dot_dimension_numbers<[1], [0], [0], [1], [0, 0, 1, 1], [], []>} : vector<4x32xf32>, vector<32x48xf32>, vector<4x48xf32> -> vector<4x48xf32>
    %cst_16 = arith.constant dense<0.000000e+00> : vector<4xf32>
    %33 = vector.multi_reduction <add>, %20, %cst_16 [1] : vector<4x8xf32> to vector<4xf32>
    %34 = vector.shape_cast %33 : vector<4xf32> to vector<4x1xf32>
    %cst_17 = arith.constant 1.000000e+00 : f32
    %35 = vector.broadcast %cst_17 : f32 to vector<4x1xf32>
    %36 = arith.maximumf %34, %35 : vector<4x1xf32>
    %37 = vector.broadcast %36 : vector<4x1xf32> to vector<4x48xf32>
    %38 = arith.divf %32, %37 : vector<4x48xf32>
    %c0_18 = arith.constant 0 : index
    %c0_19 = arith.constant 0 : index
    %39 = vector.load %arg5[%c0_18, %c0_19] : memref<64x32xf32, #tpu.memory_space<vmem>>, vector<64x32xf32>
    %c0_20 = arith.constant 0 : index
    %c0_21 = arith.constant 0 : index
    %40 = vector.load %arg6[%c0_20, %c0_21] : memref<32x32xf32, #tpu.memory_space<vmem>>, vector<32x32xf32>
    %cst_22 = arith.constant dense<0.000000e+00> : vector<4x32xf32>
    %41 = tpu.matmul %17, %39, %cst_22 {dimension_numbers = #tpu.dot_dimension_numbers<[1], [0], [0], [1], [0, 0, 1, 1], [], []>} : vector<4x64xf32>, vector<64x32xf32>, vector<4x32xf32> -> vector<4x32xf32>
    %42 = vector.broadcast %2 : vector<1x32xf32> to vector<4x32xf32>
    %43 = arith.addf %41, %42 : vector<4x32xf32>
    %cst_23 = arith.constant 5.000000e-01 : f32
    %44 = vector.broadcast %cst_23 : f32 to vector<4x32xf32>
    %45 = arith.mulf %44, %43 : vector<4x32xf32>
    %cst_24 = arith.constant 0.707106769 : f32
    %46 = vector.broadcast %cst_24 : f32 to vector<4x32xf32>
    %47 = arith.mulf %43, %46 : vector<4x32xf32>
    %48 = math.erf %47 : vector<4x32xf32>
    %cst_25 = arith.constant 1.000000e+00 : f32
    %49 = vector.broadcast %cst_25 : f32 to vector<4x32xf32>
    %50 = arith.addf %49, %48 : vector<4x32xf32>
    %51 = arith.mulf %45, %50 : vector<4x32xf32>
    %cst_26 = arith.constant dense<0.000000e+00> : vector<4x32xf32>
    %52 = tpu.matmul %51, %40, %cst_26 {dimension_numbers = #tpu.dot_dimension_numbers<[1], [0], [0], [1], [0, 0, 1, 1], [], []>} : vector<4x32xf32>, vector<32x32xf32>, vector<4x32xf32> -> vector<4x32xf32>
    %53 = vector.broadcast %3 : vector<1x32xf32> to vector<4x32xf32>
    %54 = arith.addf %52, %53 : vector<4x32xf32>
    %55 = arith.addf %54, %43 : vector<4x32xf32>
    %cst_27 = arith.constant dense<0.000000e+00> : vector<4xf32>
    %56 = vector.multi_reduction <add>, %55, %cst_27 [1] : vector<4x32xf32> to vector<4xf32>
    %57 = vector.shape_cast %56 : vector<4xf32> to vector<4x1xf32>
    %cst_28 = arith.constant 3.200000e+01 : f32
    %58 = vector.broadcast %cst_28 : f32 to vector<4x1xf32>
    %59 = arith.divf %57, %58 : vector<4x1xf32>
    %60 = vector.broadcast %59 : vector<4x1xf32> to vector<4x32xf32>
    %61 = arith.subf %55, %60 : vector<4x32xf32>
    %62 = arith.mulf %61, %61 : vector<4x32xf32>
    %cst_29 = arith.constant dense<0.000000e+00> : vector<4xf32>
    %63 = vector.multi_reduction <add>, %62, %cst_29 [1] : vector<4x32xf32> to vector<4xf32>
    %64 = vector.shape_cast %63 : vector<4xf32> to vector<4x1xf32>
    %cst_30 = arith.constant 3.200000e+01 : f32
    %65 = vector.broadcast %cst_30 : f32 to vector<4x1xf32>
    %66 = arith.divf %64, %65 : vector<4x1xf32>
    %67 = vector.broadcast %59 : vector<4x1xf32> to vector<4x32xf32>
    %68 = arith.subf %55, %67 : vector<4x32xf32>
    %cst_31 = arith.constant 9.99999974E-6 : f32
    %69 = vector.broadcast %cst_31 : f32 to vector<4x1xf32>
    %70 = arith.addf %66, %69 : vector<4x1xf32>
    %71 = math.rsqrt %70 : vector<4x1xf32>
    %72 = vector.broadcast %71 : vector<4x1xf32> to vector<4x32xf32>
    %73 = arith.mulf %68, %72 : vector<4x32xf32>
    %74 = vector.broadcast %4 : vector<1x32xf32> to vector<4x32xf32>
    %75 = arith.mulf %73, %74 : vector<4x32xf32>
    %76 = vector.broadcast %5 : vector<1x32xf32> to vector<4x32xf32>
    %77 = arith.addf %75, %76 : vector<4x32xf32>
    %c0_32 = arith.constant 0 : index
    %c0_33 = arith.constant 0 : index
    %78 = vector.load %arg7[%c0_32, %c0_33] : memref<48x32xf32, #tpu.memory_space<vmem>>, vector<48x32xf32>
    %c0_34 = arith.constant 0 : index
    %c0_35 = arith.constant 0 : index
    %79 = vector.load %arg8[%c0_34, %c0_35] : memref<32x32xf32, #tpu.memory_space<vmem>>, vector<32x32xf32>
    %cst_36 = arith.constant dense<0.000000e+00> : vector<4x32xf32>
    %80 = tpu.matmul %38, %78, %cst_36 {dimension_numbers = #tpu.dot_dimension_numbers<[1], [0], [0], [1], [0, 0, 1, 1], [], []>} : vector<4x48xf32>, vector<48x32xf32>, vector<4x32xf32> -> vector<4x32xf32>
    %81 = vector.broadcast %6 : vector<1x32xf32> to vector<4x32xf32>
    %82 = arith.addf %80, %81 : vector<4x32xf32>
    %cst_37 = arith.constant 5.000000e-01 : f32
    %83 = vector.broadcast %cst_37 : f32 to vector<4x32xf32>
    %84 = arith.mulf %83, %82 : vector<4x32xf32>
    %cst_38 = arith.constant 0.707106769 : f32
    %85 = vector.broadcast %cst_38 : f32 to vector<4x32xf32>
    %86 = arith.mulf %82, %85 : vector<4x32xf32>
    %87 = math.erf %86 : vector<4x32xf32>
    %cst_39 = arith.constant 1.000000e+00 : f32
    %88 = vector.broadcast %cst_39 : f32 to vector<4x32xf32>
    %89 = arith.addf %88, %87 : vector<4x32xf32>
    %90 = arith.mulf %84, %89 : vector<4x32xf32>
    %cst_40 = arith.constant dense<0.000000e+00> : vector<4x32xf32>
    %91 = tpu.matmul %90, %79, %cst_40 {dimension_numbers = #tpu.dot_dimension_numbers<[1], [0], [0], [1], [0, 0, 1, 1], [], []>} : vector<4x32xf32>, vector<32x32xf32>, vector<4x32xf32> -> vector<4x32xf32>
    %92 = vector.broadcast %7 : vector<1x32xf32> to vector<4x32xf32>
    %93 = arith.addf %91, %92 : vector<4x32xf32>
    %94 = arith.addf %93, %82 : vector<4x32xf32>
    %cst_41 = arith.constant dense<0.000000e+00> : vector<4xf32>
    %95 = vector.multi_reduction <add>, %94, %cst_41 [1] : vector<4x32xf32> to vector<4xf32>
    %96 = vector.shape_cast %95 : vector<4xf32> to vector<4x1xf32>
    %cst_42 = arith.constant 3.200000e+01 : f32
    %97 = vector.broadcast %cst_42 : f32 to vector<4x1xf32>
    %98 = arith.divf %96, %97 : vector<4x1xf32>
    %99 = vector.broadcast %98 : vector<4x1xf32> to vector<4x32xf32>
    %100 = arith.subf %94, %99 : vector<4x32xf32>
    %101 = arith.mulf %100, %100 : vector<4x32xf32>
    %cst_43 = arith.constant dense<0.000000e+00> : vector<4xf32>
    %102 = vector.multi_reduction <add>, %101, %cst_43 [1] : vector<4x32xf32> to vector<4xf32>
    %103 = vector.shape_cast %102 : vector<4xf32> to vector<4x1xf32>
    %cst_44 = arith.constant 3.200000e+01 : f32
    %104 = vector.broadcast %cst_44 : f32 to vector<4x1xf32>
    %105 = arith.divf %103, %104 : vector<4x1xf32>
    %106 = vector.broadcast %98 : vector<4x1xf32> to vector<4x32xf32>
    %107 = arith.subf %94, %106 : vector<4x32xf32>
    %cst_45 = arith.constant 9.99999974E-6 : f32
    %108 = vector.broadcast %cst_45 : f32 to vector<4x1xf32>
    %109 = arith.addf %105, %108 : vector<4x1xf32>
    %110 = math.rsqrt %109 : vector<4x1xf32>
    %111 = vector.broadcast %110 : vector<4x1xf32> to vector<4x32xf32>
    %112 = arith.mulf %107, %111 : vector<4x32xf32>
    %113 = vector.broadcast %8 : vector<1x32xf32> to vector<4x32xf32>
    %114 = arith.mulf %112, %113 : vector<4x32xf32>
    %115 = vector.broadcast %9 : vector<1x32xf32> to vector<4x32xf32>
    %116 = arith.addf %114, %115 : vector<4x32xf32>
    %cst_46 = arith.constant dense<0.000000e+00> : vector<4x4xf32>
    %117 = tpu.matmul %116, %77, %cst_46 {dimension_numbers = #tpu.dot_dimension_numbers<[1], [1], [0], [0], [0, 0, 1, 0], [], []>} : vector<4x32xf32>, vector<4x32xf32>, vector<4x4xf32> -> vector<4x4xf32>
    %cst_47 = arith.constant 1.000000e+00 : f32
    %118 = vector.broadcast %cst_47 : f32 to vector<4x4xf32>
    %119 = arith.mulf %117, %118 : vector<4x4xf32>
    %cst_48 = arith.constant dense<0.000000e+00> : vector<4x4xf32>
    %120 = tpu.matmul %77, %77, %cst_48 {dimension_numbers = #tpu.dot_dimension_numbers<[1], [1], [0], [0], [0, 0, 1, 0], [], []>} : vector<4x32xf32>, vector<4x32xf32>, vector<4x4xf32> -> vector<4x4xf32>
    %cst_49 = arith.constant dense<0.000000e+00> : vector<4x4xf32>
    %121 = tpu.matmul %116, %116, %cst_49 {dimension_numbers = #tpu.dot_dimension_numbers<[1], [1], [0], [0], [0, 0, 1, 0], [], []>} : vector<4x32xf32>, vector<4x32xf32>, vector<4x4xf32> -> vector<4x4xf32>
    %122 = arith.addf %120, %121 : vector<4x4xf32>
    %cst_50 = arith.constant 5.000000e-01 : f32
    %cst_51 = arith.constant 1.000000e+00 : f32
    %123 = arith.mulf %cst_50, %cst_51 : f32
    %124 = vector.broadcast %123 : f32 to vector<4x4xf32>
    %125 = arith.mulf %122, %124 : vector<4x4xf32>
    %cst_52 = arith.constant dense<0xFF800000> : vector<4xf32>
    %126 = vector.multi_reduction <maximumf>, %125, %cst_52 [1] : vector<4x4xf32> to vector<4xf32>
    %127 = vector.shape_cast %126 : vector<4xf32> to vector<4x1xf32>
    %128 = vector.broadcast %127 : vector<4x1xf32> to vector<4x4xf32>
    %129 = arith.subf %125, %128 : vector<4x4xf32>
    %130 = math.exp %129 : vector<4x4xf32>
    %cst_53 = arith.constant dense<0.000000e+00> : vector<4xf32>
    %131 = vector.multi_reduction <add>, %130, %cst_53 [1] : vector<4x4xf32> to vector<4xf32>
    %132 = vector.shape_cast %131 : vector<4xf32> to vector<4x1xf32>
    %133 = vector.broadcast %132 : vector<4x1xf32> to vector<4x4xf32>
    %134 = arith.divf %130, %133 : vector<4x4xf32>
    %cst_54 = arith.constant dense<0xFF800000> : vector<4xf32>
    %135 = vector.multi_reduction <maximumf>, %119, %cst_54 [1] : vector<4x4xf32> to vector<4xf32>
    %136 = vector.shape_cast %135 : vector<4xf32> to vector<4x1xf32>
    %137 = vector.broadcast %136 : vector<4x1xf32> to vector<4x4xf32>
    %138 = arith.subf %119, %137 : vector<4x4xf32>
    %139 = math.exp %138 : vector<4x4xf32>
    %cst_55 = arith.constant dense<0.000000e+00> : vector<4xf32>
    %140 = vector.multi_reduction <add>, %139, %cst_55 [1] : vector<4x4xf32> to vector<4xf32>
    %141 = vector.shape_cast %140 : vector<4xf32> to vector<4x1xf32>
    %142 = math.log %141 : vector<4x1xf32>
    %143 = vector.broadcast %142 : vector<4x1xf32> to vector<4x4xf32>
    %144 = arith.subf %138, %143 : vector<4x4xf32>
    %cst_56 = arith.constant dense<0xFF800000> : vector<4xf32>
    %145 = vector.multi_reduction <maximumf>, %119, %cst_56 [0] : vector<4x4xf32> to vector<4xf32>
    %146 = vector.shape_cast %145 : vector<4xf32> to vector<1x4xf32>
    %147 = vector.broadcast %146 : vector<1x4xf32> to vector<4x4xf32>
    %148 = arith.subf %119, %147 : vector<4x4xf32>
    %149 = math.exp %148 : vector<4x4xf32>
    %cst_57 = arith.constant dense<0.000000e+00> : vector<4xf32>
    %150 = vector.multi_reduction <add>, %149, %cst_57 [0] : vector<4x4xf32> to vector<4xf32>
    %151 = vector.shape_cast %150 : vector<4xf32> to vector<1x4xf32>
    %152 = math.log %151 : vector<1x4xf32>
    %153 = vector.broadcast %152 : vector<1x4xf32> to vector<4x4xf32>
    %154 = arith.subf %148, %153 : vector<4x4xf32>
    %155 = arith.addf %144, %154 : vector<4x4xf32>
    %156 = arith.mulf %134, %155 : vector<4x4xf32>
    %157 = vector.shape_cast %156 : vector<4x4xf32> to vector<1x4x4xf32>
    %cst_58 = arith.constant dense<0.000000e+00> : vector<1xf32>
    %158 = vector.multi_reduction <add>, %157, %cst_58 [1, 2] : vector<1x4x4xf32> to vector<1xf32>
    %159 = vector.shape_cast %158 : vector<1xf32> to vector<1x1x1xf32>
    %160 = vector.extract %159[0, 0, 0] : f32 from vector<1x1x1xf32>
    %cst_59 = arith.constant 0.000000e+00 : f32
    %161 = arith.subf %cst_59, %160 : f32
    %cst_60 = arith.constant 8.000000e+00 : f32
    %162 = arith.divf %161, %cst_60 : f32
    %c0_61 = arith.constant 0 : index
    %c0_62 = arith.constant 0 : index
    %163 = memref.load %arg10[%c0_61, %c0_62] : memref<1x1xf32, #tpu.memory_space<smem>>
    memref.store %162, %arg10[%c0_61, %c0_62] : memref<1x1xf32, #tpu.memory_space<smem>>
    return
  }
}

</mosaic_0001>

<bundles_post_ra>
// kernel: tpu_custom_call.1
= control target key start
LH: loop header
LB: loop body
LE: loop exit
PB: predicated region body
PF: predicated region fallthrough
CT: control target
= control target key end

     0   :  { %15 = vsyncpa [#allocation3], 0  ;;  %s1809_s0 = inlined_call_operand.vmem [shape: f32[4,16,48], index: 0, kind: input, shape index: {}]   ;;  %s1810_s1 = inlined_call_operand.hbm [shape: s32[4,8], index: 1, kind: input, shape index: {}]   ;;  %s1811_s2 = inlined_call_operand.hbm [shape: s32[4,8], index: 2, kind: input, shape index: {}]   ;;  %s1812_s3 = inlined_call_operand.vmem [shape: f32[48,64], index: 3, kind: input, shape index: {}]   ;;  %s1813_s4 = inlined_call_operand.vmem [shape: f32[32,48], index: 4, kind: input, shape index: {}]   ;;  %s1814_s5 = inlined_call_operand.vmem [shape: f32[64,32], index: 5, kind: input, shape index: {}]   ;;  %s1815_s6 = inlined_call_operand.hbm [shape: f32[32,32], index: 6, kind: input, shape index: {}]   ;;  %s1816_s7 = inlined_call_operand.vmem [shape: f32[48,32], index: 7, kind: input, shape index: {}]   ;;  %s1817_s8 = inlined_call_operand.hbm [shape: f32[32,32], index: 8, kind: input, shape index: {}]   ;;  %s1818_s9 = inlined_call_operand.vmem [shape: f32[16,128], index: 9, kind: input, shape index: {}]   ;;  %s1819_s10 = inlined_call_operand.hbm [shape: f32[1,1], index: 10, kind: output, shape index: {}]  }
   0x1   :  { %16 = vsyncpa [#allocation6], 0 }
   0x2   :  { %17 = vsyncpa [#allocation9], 0 }
   0x3   :  { %18 = vsyncpa [#allocation4], 0  ;;  %s1459_s13 = smov [#allocation5]   ;;  %s1460_s15 = smov [#allocation2]  }
   0x4   :  { %s37_s14 = sshll.u32 %s1459_s13, 4  ;;  %s27_s16 = sshll.u32 %s1460_s15, 4  ;;  %s38_s14 = int_to_ptr.vmem [resolvable:$true] %s37_s14  ;;  %s28_s16 = int_to_ptr.vmem [resolvable:$true] %s27_s16 }
   0x5   :  { %s1353_s19 = scalar_lea.hbm %s1811_s2, 64 }
   0x6   :  { %p1354_p0 = scmp.ne.s32.totalorder %s1811_s2, %s1353_s19  ;;  %p1357_p1 = scmp.lt.u32.totalorder %s1353_s19, %s1811_s2 }
   0x8   :  { %p1359_p2 = pnand %p1357_p1, %p1354_p0 }
   0xa   :  { %1362 = shalt.err (!%p1359_p2)
}
   0xb   :  { %s1363_s24 = scalar_lea.vmem %s38_s14, 64  ;;  %p1368_p4 = scmp.lt.s32.totalorder %s38_s14, %s38_s14 }
   0xc   :  { %p1364_p3 = scmp.ne.s32.totalorder %s38_s14, %s1363_s24  ;;  %p1369_p5 = scmp.lt.s32.totalorder %s1363_s24, %s1363_s24 }
   0xe   :  { %p1370_p6 = por %p1369_p5, %p1368_p4 }
  0x10   :  { %p1371_p7 = pnand %p1370_p6, %p1364_p3 }
  0x12   :  { %1374 = shalt.err (!%p1371_p7)
}
  0x13   :  { %40 = dma.hbm_to_vmem [thread:$0]  %s1811_s2, 64, %s38_s14, [#allocation6]  }
  0x14   :  { %s1375_s29 = scalar_lea.hbm %s1810_s1, 64 }
  0x15   :  { %p1376_p8 = scmp.ne.s32.totalorder %s1810_s1, %s1375_s29  ;;  %p1379_p9 = scmp.lt.u32.totalorder %s1375_s29, %s1810_s1 }
  0x17   :  { %p1381_p10 = pnand %p1379_p9, %p1376_p8 }
  0x19   :  { %1384 = shalt.err (!%p1381_p10)
}
  0x1a   :  { %s1385_s15 = scalar_lea.vmem %s28_s16, 64  ;;  %p1390_p12 = scmp.lt.s32.totalorder %s28_s16, %s28_s16 }
  0x1b   :  { %p1386_p11 = scmp.ne.s32.totalorder %s28_s16, %s1385_s15  ;;  %p1391_p13 = scmp.lt.s32.totalorder %s1385_s15, %s1385_s15 }
  0x1d   :  { %p1392_p0 = por %p1391_p13, %p1390_p12 }
  0x1f   :  { %p1393_p1 = pnand %p1392_p0, %p1386_p11 }
  0x21   :  { %1396 = shalt.err (!%p1393_p1)
}
  0x22   :  { %30 = dma.hbm_to_vmem [thread:$0]  %s1810_s1, 64, %s28_s16, [#allocation3]  }
  0x23   :  { %s1461_s17 = smov [#allocation7]   ;;  %s1397_s21 = scalar_lea.hbm %s1815_s6, 512 }
  0x24   :  { %s52_s18 = sshll.u32 %s1461_s17, 4  ;;  %p1398_p2 = scmp.ne.s32.totalorder %s1815_s6, %s1397_s21  ;;  %s53_s18 = int_to_ptr.vmem [resolvable:$true] %s52_s18 }
  0x25   :  { %p1401_p3 = scmp.lt.u32.totalorder %s1397_s21, %s1815_s6 }
  0x27   :  { %p1403_p4 = pnand %p1401_p3, %p1398_p2 }
  0x29   :  { %1406 = shalt.err (!%p1403_p4)
}
  0x2a   :  { %s1407_s26 = scalar_lea.vmem %s53_s18, 512  ;;  %p1412_p6 = scmp.lt.s32.totalorder %s53_s18, %s53_s18 }
  0x2b   :  { %p1408_p5 = scmp.ne.s32.totalorder %s53_s18, %s1407_s26  ;;  %p1413_p7 = scmp.lt.s32.totalorder %s1407_s26, %s1407_s26 }
  0x2d   :  { %p1414_p8 = por %p1413_p7, %p1412_p6 }
  0x2f   :  { %p1415_p9 = pnand %p1414_p8, %p1408_p5 }
  0x31   :  { %1418 = shalt.err (!%p1415_p9)
}
  0x32   :  { %s1462_s1 = smov 128   ;;  %s1463_s16 = smov 8  }
  0x33   :  { %58 = dma.hbm_to_vmem [thread:$0]  %s1815_s6, 512, %s53_s18, [#allocation6], %s1462_s1, %s1462_s1, %s1463_s16  }
  0x34   :  { %s1464_s29 = smov [#allocation8]   ;;  %s1419_s13 = scalar_lea.hbm %s1817_s8, 512 }
  0x35   :  { %s66_s30 = sshll.u32 %s1464_s29, 4  ;;  %p1420_p10 = scmp.ne.s32.totalorder %s1817_s8, %s1419_s13  ;;  %s67_s30 = int_to_ptr.vmem [resolvable:$true] %s66_s30 }
  0x36   :  { %p1423_p11 = scmp.lt.u32.totalorder %s1419_s13, %s1817_s8 }
  0x38   :  { %p1425_p12 = pnand %p1423_p11, %p1420_p10 }
  0x3a   :  { %1428 = shalt.err (!%p1425_p12)
}
  0x3b   :  { %s1429_s19 = scalar_lea.vmem %s67_s30, 512  ;;  %p1434_p0 = scmp.lt.s32.totalorder %s67_s30, %s67_s30 }
  0x3c   :  { %p1430_p13 = scmp.ne.s32.totalorder %s67_s30, %s1429_s19  ;;  %p1435_p1 = scmp.lt.s32.totalorder %s1429_s19, %s1429_s19 }
  0x3e   :  { %p1436_p2 = por %p1435_p1, %p1434_p0 }
  0x40   :  { %p1437_p3 = pnand %p1436_p2, %p1430_p13 }
  0x42   :  { %1440 = shalt.err (!%p1437_p3)
}
  0x43   :  { %72 = dma.hbm_to_vmem [thread:$0]  %s1817_s8, 512, %s67_s30, [#allocation9], %s1462_s1, %s1462_s1, %s1463_s16  }
  0x44   :  { %1451 = dma.done.wait [#allocation3], 64  }
  0x45   :  { %1452 = vsyncadd [#allocation3], 4294967232 }
  0x46   :  { %1453 = dma.done.wait [#allocation6], 576  }
  0x47   :  { %1454 = vsyncadd [#allocation6], 4294966720 }
  0x48   :  { %1455 = dma.done.wait [#allocation9], 512  }
  0x49   :  { %1456 = vsyncadd [#allocation9], 4294966784  ;;  %v1465_v0 = vmov 0.0|0.0   ;;  %vm1466_vm0 = vmmov 0   ;;  %v1467_v1 = vmov 0.0   ;;  %v145_v2 = vlaneseq  ;;  %v139_v4 = vld [vmem:[%s1812_s3] sm:$0xff] }
  0x4a   :  { %1269 = vmatprep.subr.bf16.mxu0 %v1465_v0  ;;  %1184 = vmatprep.mubr.msk.f32.mxu0 %vm1466_vm0, %v1467_v1  ;;  %v140_v5 = vld [vmem:[%s1812_s3 + $0x8] sm:$0xff]  ;;  %v141_v6 = vld [vmem:[%s1812_s3 + $0x10] sm:$0xff]  ;;  %vm97_vm1 = vcmask 392192   ;;  %v142_v8 = vld [vmem:[%s1812_s3 + $0x18] sm:$0xff]  ;;  %vm153_vm2 = vcmask 1041409   ;;  %vm155_vm3 = vcmask 1042434  }
  0x4b   :  { %1278 = vmatprep.subr.bf16.mxu1 %v1465_v0  ;;  %1195 = vmatprep.mubr.msk.f32.mxu1 %vm1466_vm0, %v1467_v1  ;;  %v1579_v3 = vshrl.u32 %v145_v2, 7  ;;  %v1270_v7 = vpack.c.bf16 %v140_v5, %v139_v4  ;;  %v143_v10 = vld [vmem:[%s1812_s3 + $0x20] sm:$0xff]  ;;  %v90_v12 = vld [vmem:[%s1809_s0 + $0x8] sm:$0xff]  ;;  %v91_v13 = vld [vmem:[%s1809_s0 + $0x10] sm:$0xff]  ;;  %v1273_v17 = vpack.c.bf16 %v142_v8, %v141_v6  ;;  %vm157_vm4 = vcmask 1043459   ;;  %s1441_s13 = scalar_lea.hbm %s1819_s10, 16 }
  0x4c   :  { %v89_v11 = vld [vmem:[%s1809_s0] sm:$0xff]  ;;  %v92_v18 = vld [vmem:[%s1809_s0 + $0x18] sm:$0xff]  ;;  %v94_v20 = vld [vmem:[%s1809_s0 + $0x28] sm:$0xff]  ;;  %v99_v22 = vsel %vm97_vm1, %v90_v12, 0.0  ;;  %v107_v23 = vsel %vm97_vm1, %v91_v13, 0.0  ;;  %vm420_vm5 = vcmask 60416   ;;  %p1442_p4 = scmp.ne.s32.totalorder %s1819_s10, %s1441_s13  ;;  %p1445_p5 = scmp.lt.u32.totalorder %s1441_s13, %s1819_s10 }
  0x4d   :  { %v1594_v9 = vsub.s32 0, %v1579_v3  ;;  %v1609_v14 = vsub.s32 2, %v1579_v3  ;;  %v1612_v15 = vsub.s32 1, %v1579_v3  ;;  %v1615_v16 = vsub.s32 3, %v1579_v3  ;;  %1271 = vmatpush3.bf16.msra.mxu0 %v1270_v7  ;;  %v93_v19 = vld [vmem:[%s1809_s0 + $0x20] sm:$0xff]  ;;  %v144_v24 = vld [vmem:[%s1812_s3 + $0x28] sm:$0xff] }
  0x4e   :  { %v98_v21 = vsel %vm97_vm1, %v89_v11, 0.0  ;;  %1272 = vmatprep.subr.bf16.mxu0 %v1465_v0  ;;  %v95_v25 = vld [vmem:[%s1809_s0 + $0x30] sm:$0xff]  ;;  %v96_v26 = vld [vmem:[%s1809_s0 + $0x38] sm:$0xff]  ;;  %v108_v28 = vsel %vm97_vm1, %v92_v18, 0.0  ;;  %v116_v29 = vsel %vm97_vm1, %v93_v19, 0.0  ;;  %v117_v30 = vsel %vm97_vm1, %v94_v20, 0.0  ;;  %p1447_p6 = pnand %p1445_p5, %p1442_p4 }
  0x4f   :  { %v100_v27 = vadd.f32 %v99_v22, %v98_v21  ;;  %v109_v31 = vadd.f32 %v108_v28, %v107_v23  ;;  %v118_v32 = vadd.f32 %v117_v30, %v116_v29  ;;  %v125_v33 = vsel %vm97_vm1, %v95_v25, 0.0  ;;  %v231_v35 = vld [vmem:[#allocation2] sm:$0xf]  ;;  %v232_v36 = vld [vmem:[#allocation5] sm:$0xf]  ;;  %v338_v22 = vld [vmem:[%s1813_s4 + $0x8] sm:$0xff] }
  0x50   :  { %v126_v34 = vsel %vm97_vm1, %v96_v26, 0.0  ;;  %v239_v39 = vrot.slane %v231_v35, %v1594_v9  ;;  %v253_v40 = vrot.slane %v231_v35, %v1609_v14  ;;  %v1276_v41 = vpack.c.bf16 %v144_v24, %v143_v10  ;;  %v337_v21 = vld [vmem:[%s1813_s4] sm:$0xff]  ;;  %v339_v23 = vld [vmem:[%s1813_s4 + $0x10] sm:$0xff]  ;;  %v340_v26 = vld [vmem:[%s1813_s4 + $0x18] sm:$0xff] }
  0x51   :  { %v101_v37 = vrot.slane %v100_v27, 4  ;;  %v127_v38 = vadd.f32 %v126_v34, %v125_v33  ;;  %1274 = vmatpush3.bf16.msra.mxu0 %v1273_v17  ;;  %v110_v42 = vrot.slane %v109_v31, 4  ;;  %v119_v43 = vrot.slane %v118_v32, 4 }
  0x52   :  { %1275 = vmatprep.subr.bf16.mxu0 %v1465_v0  ;;  %241 = vbcast.lane.b32.xlu0 %v239_v39, 256  ;;  %v246_v46 = vrot.slane %v231_v35, %v1612_v15  ;;  %v233_v47 = vcvt.s32.f32 %v232_v36  ;;  %v260_v50 = vrot.slane %v231_v35, %v1615_v16  ;;  %v1279_v25 = vpack.c.bf16 %v338_v22, %v337_v21 }
  0x53   :  { %v102_v44 = vadd.f32 %v101_v37, %v100_v27  ;;  %v128_v45 = vrot.slane %v127_v38, 4  ;;  %v111_v48 = vadd.f32 %v110_v42, %v109_v31  ;;  %v120_v49 = vadd.f32 %v119_v43, %v118_v32  ;;  %255 = vbcast.lane.b32.xlu1 %v253_v40, 256 }
  0x54   :  { %v279_v57 = vrot.slane %v233_v47, %v1594_v9  ;;  %v286_v60 = vrot.slane %v233_v47, %v1612_v15  ;;  %v293_v7 = vrot.slane %v233_v47, %v1609_v14  ;;  %v300_v11 = vrot.slane %v233_v47, %v1615_v16  ;;  %1280 = vmatpush3.bf16.msra.mxu1 %v1279_v25 }
  0x55   :  { %v103_v51 = vrot.slane %v102_v44, 2  ;;  %v129_v52 = vadd.f32 %v128_v45, %v127_v38  ;;  %1277 = vmatpush3.bf16.msra.mxu0 %v1276_v41  ;;  %v112_v53 = vrot.slane %v111_v48, 2  ;;  %v121_v54 = vrot.slane %v120_v49, 2  ;;  %1281 = vmatprep.subr.bf16.mxu1 %v1465_v0 }
  0x56   :  { %248 = vbcast.lane.b32.xlu0 %v246_v46, 256  ;;  %1296 = vmatprep.subr.bf16.mxu0 %v1465_v0  ;;  %v1282_v28 = vpack.c.bf16 %v340_v26, %v339_v23  ;;  %v421_v29 = vsel %vm420_vm5, %v233_v47, 0.0  ;;  %v235_v30 = vand.u32 127, %v145_v2  ;;  %vm308_vm10 = vcmask 261120   ;;  %v429_v23 = vld [vmem:[%s1814_s5 + $0x10] sm:$0xff] }
  0x57   :  { %v104_v55 = vadd.f32 %v103_v51, %v102_v44  ;;  %v130_v56 = vrot.slane %v129_v52, 2  ;;  %v113_v58 = vadd.f32 %v112_v53, %v111_v48  ;;  %v122_v59 = vadd.f32 %v121_v54, %v120_v49  ;;  %262 = vbcast.lane.b32.xlu1 %v260_v50, 256 }
  0x58   :  { %1283 = vmatpush3.bf16.msra.mxu1 %v1282_v28  ;;  %v432_v28 = vld [vmem:[%s1814_s5 + $0x28] sm:$0xff]  ;;  %vm443_vm11 = vcmask 523264   ;;  %vm600_vm12 = vcmask 257024   ;;  %vm1035_vm13 = vcmask 27648  }
  0x59   :  { %v105_v61 = vrot.slane %v104_v55, 1  ;;  %v131_v62 = vadd.f32 %v130_v56, %v129_v52  ;;  %v114_v63 = vrot.slane %v113_v58, 1  ;;  %v123_v4 = vrot.slane %v122_v59, 1  ;;  %1284 = vmatprep.subr.bf16.mxu1 %v1465_v0 }
  0x5a   :  { %281 = vbcast.lane.b32.xlu0 %v279_v57, 256 }
  0x5b   :  { %v106_v5 = vadd.f32 %v105_v61, %v104_v55  ;;  %v132_v6 = vrot.slane %v131_v62, 1  ;;  %v115_v8 = vadd.f32 %v114_v63, %v113_v58  ;;  %v124_v10 = vadd.f32 %v123_v4, %v122_v59  ;;  %288 = vbcast.lane.b32.xlu1 %v286_v60, 256 }
  0x5d   :  { %v133_v12 = vadd.f32 %v132_v6, %v131_v62  ;;  %v135_v13 = vmul.f32 0.0625, %v106_v5  ;;  %v136_v17 = vmul.f32 0.0625, %v115_v8  ;;  %v137_v18 = vmul.f32 0.0625, %v124_v10 }
  0x5e   :  { %295 = vbcast.lane.b32.xlu0 %v293_v7, 256 }
  0x5f   :  { %v138_v19 = vmul.f32 0.0625, %v133_v12  ;;  %v154_v20 = vsel %vm153_vm2, %v136_v17, %v135_v13  ;;  %302 = vbcast.lane.b32.xlu1 %v300_v11, 256  ;;  %v427_v12 = vld [vmem:[%s1814_s5] sm:$0xff]  ;;  %v428_v13 = vld [vmem:[%s1814_s5 + $0x8] sm:$0xff] }
  0x60   :  { %v156_v24 = vsel %vm155_vm3, %v137_v18, %v154_v20  ;;  %v1285_v21 = vpack.c.bf16 %v428_v13, %v427_v12 }
  0x61   :  { %v158_v27 = vsel %vm157_vm4, %v138_v19, %v156_v24  ;;  %v430_v24 = vld [vmem:[%s1814_s5 + $0x18] sm:$0xff] }
  0x62   :  { %1185 = vmatmul.mubr.msk.f32.vlgmr.msra.gmra.mrb[0].mxu0 %vm97_vm1, %v158_v27  ;;  %v1288_v26 = vpack.c.bf16 %v430_v24, %v429_v23  ;;  %v431_v27 = vld [vmem:[%s1814_s5 + $0x20] sm:$0xff] }
  0x63   :  { %1225 = vmatprep.mubr.msk.f32.mxu0 %vm1466_vm0, %v1467_v1 }
  0x7d   :  { %422 = vadd.xlane.f32.xlu0 %v421_v29  ;;  %v1291_v29 = vpack.c.bf16 %v432_v28, %v431_v27 }
  0xc4   :  { %v242_v31 = vpop.permute.xlu0 %241 }
  0xc5   :  { %v256_v32 = vpop.permute.xlu1 %255  ;;  %vm264_vm6 = vcmp.eq.s32.totalorder %v242_v31, %v235_v30  ;;  %v434_v31 = vld [vmem:[%s1814_s5 + $0x38] sm:$0xff] }
  0xc6   :  { %v1113_v35 = vsel %vm264_vm6, 1.0, %v1467_v1  ;;  %vm266_vm8 = vcmp.eq.s32.totalorder %v256_v32, %v235_v30 }
  0xc7   :  { %v1115_v41 = vsel %vm266_vm8, 1.0, %v1467_v1 }
  0xc8   :  { %v249_v33 = vpop.permute.xlu0 %248 }
  0xc9   :  { %vm265_vm7 = vcmp.eq.s32.totalorder %v249_v33, %v235_v30  ;;  %v263_v34 = vpop.permute.xlu1 %262  ;;  %v1720_v33 = vld [vmem:[%s1818_s9] sm:$0xff] }
  0xca   :  { %v1114_v36 = vsel %vm265_vm7, 1.0, %v1467_v1  ;;  %vm267_vm9 = vcmp.eq.s32.totalorder %v263_v34, %v235_v30  ;;  %v433_v30 = vld [vmem:[%s1814_s5 + $0x30] sm:$0xff]  ;;  %v148_v34 = vrot.slane %v1720_v33, %v1594_v9  ;;  %v525_v13 = vrot.slane %v1720_v33, %v1609_v14 }
  0xcb   :  { %v1116_v42 = vsel %vm267_vm9, 1.0, %v1467_v1  ;;  %v1294_v32 = vpack.c.bf16 %v434_v31, %v433_v30  ;;  %v719_v30 = vsub.s32 6, %v1579_v3 }
  0xcc   :  { %v282_v37 = vpop.permute.xlu0 %281 }
  0xcd   :  { %v304_v38 = vmul.f32 %v1113_v35, %v282_v37  ;;  %v289_v39 = vpop.permute.xlu1 %288 }
  0xce   :  { %v305_v40 = vmul.f32 %v1114_v36, %v289_v39  ;;  %v436_v39 = vld [vmem:[#allocation7 + $0x8] sm:$0xff] }
  0xcf   :  { %v309_v2 = vsel %vm308_vm10, %v304_v38, 0.0  ;;  %v435_v38 = vld [vmem:[#allocation7] sm:$0xff] }
  0xd0   :  { %v310_v43 = vrot.slane %v309_v2, 4  ;;  %v316_v44 = vsel %vm308_vm10, %v305_v40, 0.0  ;;  %v296_v45 = vpop.permute.xlu0 %295  ;;  %v1297_v40 = vpack.c.bf16 %v436_v39, %v435_v38 }
  0xd1   :  { %v317_v46 = vrot.slane %v316_v44, 4  ;;  %v306_v47 = vmul.f32 %v1115_v41, %v296_v45  ;;  %v303_v48 = vpop.permute.xlu1 %302  ;;  %v437_v41 = vld [vmem:[#allocation7 + $0x10] sm:$0xff]  ;;  %v442_v45 = vrot.slane %v1720_v33, %v1612_v15 }
  0xd2   :  { %v311_v49 = vadd.f32 %v310_v43, %v309_v2  ;;  %v307_v50 = vmul.f32 %v1116_v42, %v303_v48  ;;  %1298 = vmatpush3.bf16.msra.mxu0 %v1297_v40  ;;  %v438_v2 = vld [vmem:[#allocation7 + $0x18] sm:$0xff] }
  0xd3   :  { %v318_v51 = vadd.f32 %v317_v46, %v316_v44  ;;  %v323_v52 = vsel %vm308_vm10, %v306_v47, 0.0  ;;  %1299 = vmatprep.subr.bf16.mxu0 %v1465_v0  ;;  %v1300_v42 = vpack.c.bf16 %v438_v2, %v437_v41 }
  0xd4   :  { %v312_v53 = vrot.slane %v311_v49, 2  ;;  %v324_v54 = vrot.slane %v323_v52, 4  ;;  %v330_v55 = vsel %vm308_vm10, %v307_v50, 0.0 }
  0xd5   :  { %v319_v56 = vrot.slane %v318_v51, 2  ;;  %v331_v57 = vrot.slane %v330_v55, 4 }
  0xd6   :  { %v313_v58 = vadd.f32 %v312_v53, %v311_v49  ;;  %v325_v59 = vadd.f32 %v324_v54, %v323_v52  ;;  %1301 = vmatpush3.bf16.msra.mxu0 %v1300_v42  ;;  %v625_v52 = vld [vmem:[%s1816_s7] sm:$0xff]  ;;  %v626_v53 = vld [vmem:[%s1816_s7 + $0x8] sm:$0xff] }
  0xd7   :  { %v320_v60 = vadd.f32 %v319_v56, %v318_v51  ;;  %v332_v61 = vadd.f32 %v331_v57, %v330_v55  ;;  %1302 = vmatprep.subr.bf16.mxu0 %v1465_v0  ;;  %v1303_v15 = vpack.c.bf16 %v626_v53, %v625_v52 }
  0xd8   :  { %v314_v62 = vrot.slane %v313_v58, 1  ;;  %v326_v63 = vrot.slane %v325_v59, 2 }
  0xd9   :  { %v321_v4 = vrot.slane %v320_v60, 1  ;;  %v333_v5 = vrot.slane %v332_v61, 2 }
  0xda   :  { %v315_v6 = vadd.f32 %v314_v62, %v313_v58  ;;  %v327_v7 = vadd.f32 %v326_v63, %v325_v59  ;;  %v627_v58 = vld [vmem:[%s1816_s7 + $0x10] sm:$0xff]  ;;  %v628_v59 = vld [vmem:[%s1816_s7 + $0x18] sm:$0xff]  ;;  %v630_v62 = vld [vmem:[%s1816_s7 + $0x28] sm:$0xff] }
  0xdb   :  { %v322_v8 = vadd.f32 %v321_v4, %v320_v60  ;;  %v334_v10 = vadd.f32 %v333_v5, %v332_v61  ;;  %v1306_v60 = vpack.c.bf16 %v628_v59, %v627_v58  ;;  %v629_v61 = vld [vmem:[%s1816_s7 + $0x20] sm:$0xff]  ;;  %v810_v59 = vsub.s32 7, %v1579_v3 }
  0xdc   :  { %v328_v11 = vrot.slane %v327_v7, 1  ;;  %v1309_v63 = vpack.c.bf16 %v630_v62, %v629_v61 }
  0xdd   :  { %v335_v17 = vrot.slane %v334_v10, 1  ;;  %v345_v18 = vsel %vm153_vm2, %v322_v8, %v315_v6  ;;  %v631_v6 = vld [vmem:[#allocation8] sm:$0xff] }
  0xde   :  { %v329_v19 = vadd.f32 %v328_v11, %v327_v7  ;;  %v632_v7 = vld [vmem:[#allocation8 + $0x8] sm:$0xff]  ;;  %v634_v11 = vld [vmem:[#allocation8 + $0x18] sm:$0xff] }
  0xdf   :  { %v336_v20 = vadd.f32 %v335_v17, %v334_v10  ;;  %v1312_v8 = vpack.c.bf16 %v632_v7, %v631_v6  ;;  %v633_v10 = vld [vmem:[#allocation8 + $0x10] sm:$0xff] }
  0xe0   :  { %v346_v22 = vsel %vm155_vm3, %v329_v19, %v345_v18  ;;  %v1315_v12 = vpack.c.bf16 %v634_v11, %v633_v10 }
  0xe1   :  { %v347_v25 = vsel %vm157_vm4, %v336_v20, %v346_v22  ;;  %v637_v22 = vsub.s32 5, %v1579_v3 }
  0xe2   :  { %1196 = vmatmul.mubr.msk.f32.vlgmr.msra.gmra.mrb[0].mxu1 %vm308_vm10, %v347_v25 }
  0xe3   :  { %1286 = vmatpush3.bf16.msra.mxu1 %v1285_v21  ;;  %1214 = vmatprep.mubr.msk.f32.mxu1 %vm1466_vm0, %v1467_v1 }
  0xe4   :  { %1287 = vmatprep.subr.bf16.mxu1 %v1465_v0 }
  0xe7   :  { %1289 = vmatpush3.bf16.msra.mxu1 %v1288_v26 }
  0xe8   :  { %1290 = vmatprep.subr.bf16.mxu1 %v1465_v0 }
  0xeb   :  { %1292 = vmatpush3.bf16.msra.mxu1 %v1291_v29 }
  0xec   :  { %1293 = vmatprep.subr.bf16.mxu1 %v1465_v0 }
  0xef   :  { %1295 = vmatpush3.bf16.msra.mxu1 %v1294_v32 }
  0xf0   :  { %1311 = vmatprep.subr.bf16.mxu1 %v1465_v0 }
 0x10a   :  { %v423_v50 = vpop.xlane.xlu0 %422 }
 0x10b   :  { %v424_v51 = vmax.f32 %v423_v50, 1.0  ;;  %v622_v50 = vsub.s32 4, %v1579_v3 }
 0x135   :  { %v227_v35 = vpop.f32.mrb[0].mxu0 }
 0x136   :  { %v228_v36 = vadd.f32 %v227_v35, %v148_v34  ;;  %v1186_v37 = vpop.f32.mrb[1].mxu0  ;;  %v720_v34 = vrot.slane %v1720_v33, %v719_v30 }
 0x138   :  { %1215 = vmatmul.mubr.msk.f32.vlgmr.msra.gmra.mrb[2].mxu1 %vm443_vm11, %v228_v36 }
 0x139   :  { %1251 = vmatprep.mubr.msk.f32.mxu1 %vm1466_vm0, %v1467_v1  ;;  %1313 = vmatpush3.bf16.msra.mxu1 %v1312_v8 }
 0x13a   :  { %1314 = vmatprep.subr.bf16.mxu1 %v1465_v0 }
 0x13d   :  { %1316 = vmatpush3.bf16.msra.mxu1 %v1315_v12 }
 0x13e   :  { %1259 = vmatprep.subr.mxu1 %v1467_v1 }
 0x1b5   :  { %v416_v43 = vpop.f32.mrb[0].mxu1 }
 0x1b6   :  { %v1197_v44 = vpop.f32.mrb[1].mxu1 }
 0x20b   :  { %v513_v46 = vpop.f32.mrb[2].mxu1 }
 0x20c   :  { %v514_v47 = vadd.f32 %v513_v46, %v442_v45  ;;  %v1216_v48 = vpop.f32.mrb[3].mxu1 }
 0x20e   :  { %v518_v49 = vmul.f32 0.70710677, %v514_v47  ;;  %v517_v55 = vmul.f32 0.5, %v514_v47 }
 0x210   :  { %1331 = verf.f32 %v518_v49 }
 0x211   :  { %1333 = vrcp.f32 %v424_v51  ;;  %v618_v51 = vrot.slane %v1720_v33, %v1615_v16  ;;  %v811_v16 = vrot.slane %v1720_v33, %v810_v59 }
 0x21a   :  { %v1332_v54 = vpop.eup %1331 }
 0x21b   :  { %v520_v56 = vadd.f32 1.0, %v1332_v54  ;;  %v1334_v4 = vpop.eup %1333  ;;  %v623_v54 = vrot.slane %v1720_v33, %v622_v50 }
 0x21c   :  { %v426_v5 = vmul.f32 %v1334_v4, %v416_v43 }
 0x21d   :  { %v521_v57 = vmul.f32 %v520_v56, %v517_v55 }
 0x21f   :  { %1226 = vmatmul.mubr.msk.f32.vlgmr.msra.gmra.mrb[2].mxu0 %vm308_vm10, %v521_v57 }
 0x220   :  { %1304 = vmatpush3.bf16.msra.mxu0 %v1303_v15  ;;  %1240 = vmatprep.mubr.msk.f32.mxu0 %vm1466_vm0, %v1467_v1 }
 0x221   :  { %1305 = vmatprep.subr.bf16.mxu0 %v1465_v0 }
 0x224   :  { %1307 = vmatpush3.bf16.msra.mxu0 %v1306_v60  ;;  %v88_v60 = vld [vmem:[%s1818_s9 + $0x8] sm:$0xff] }
 0x225   :  { %1308 = vmatprep.subr.bf16.mxu0 %v1465_v0  ;;  %v638_v0 = vrot.slane %v1720_v33, %v637_v22 }
 0x228   :  { %1310 = vmatpush3.bf16.msra.mxu0 %v1309_v63  ;;  %v816_v63 = vrot.slane %v88_v60, %v1594_v9 }
 0x229   :  { %1254 = vmatprep.subr.mxu0 %v1467_v1 }
 0x22b   :  { %1241 = vmatmul.mubr.msk.f32.vlgmr.msra.gmra.mrb[4].mxu0 %vm97_vm1, %v426_v5 }
 0x22c   :  { %1256 = vmatprep.mubr.msk.f32.mxu0 %vm1466_vm0, %v1467_v1 }
 0x2f2   :  { %v595_v17 = vpop.f32.mrb[2].mxu0 }
 0x2f3   :  { %v596_v18 = vadd.f32 %v595_v17, %v525_v13  ;;  %v1227_v19 = vpop.f32.mrb[3].mxu0 }
 0x2f5   :  { %v599_v20 = vadd.f32 %v596_v18, %v514_v47 }
 0x2f7   :  { %v601_v21 = vsel %vm600_vm12, %v599_v20, 0.0 }
 0x2f8   :  { %602 = vadd.xlane.f32.xlu0 %v601_v21 }
 0x2fe   :  { %v708_v23 = vpop.f32.mrb[4].mxu0 }
 0x2ff   :  { %v709_v24 = vadd.f32 %v708_v23, %v638_v0  ;;  %v1242_v25 = vpop.f32.mrb[5].mxu0 }
 0x301   :  { %v713_v26 = vmul.f32 0.70710677, %v709_v24  ;;  %v712_v28 = vmul.f32 0.5, %v709_v24 }
 0x303   :  { %1335 = verf.f32 %v713_v26 }
 0x30d   :  { %v1336_v27 = vpop.eup %1335 }
 0x30e   :  { %v715_v14 = vadd.f32 1.0, %v1336_v27 }
 0x310   :  { %v716_v29 = vmul.f32 %v715_v14, %v712_v28 }
 0x312   :  { %1252 = vmatmul.mubr.msk.f32.vlgmr.msra.gmra.mrb[4].mxu1 %vm308_vm10, %v716_v29 }
 0x313   :  { %1261 = vmatprep.mubr.msk.f32.mxu1 %vm1466_vm0, %v1467_v1 }
 0x385   :  { %v603_v31 = vpop.xlane.xlu0 %602 }
 0x386   :  { %v605_v32 = vmul.f32 0.03125, %v603_v31 }
 0x388   :  { %v606_v36 = vsub.f32 %v599_v20, %v605_v32 }
 0x38a   :  { %v607_v41 = vmul.f32 %v606_v36, %v606_v36 }
 0x38c   :  { %v608_v2 = vsel %vm600_vm12, %v607_v41, 0.0 }
 0x3e5   :  { %v790_v35 = vpop.f32.mrb[4].mxu1 }
 0x3e6   :  { %v791_v37 = vadd.f32 %v790_v35, %v720_v34  ;;  %v1253_v38 = vpop.f32.mrb[5].mxu1 }
 0x3e8   :  { %v794_v39 = vadd.f32 %v791_v37, %v709_v24 }
 0x3ea   :  { %v795_v40 = vsel %vm600_vm12, %v794_v39, 0.0 }
 0x3eb   :  { %796 = vadd.xlane.f32.xlu1 %v795_v40 }
 0x3ef   :  { %609 = vadd.xlane.f32.xlu1 %v608_v2 }
 0x478   :  { %v797_v42 = vpop.xlane.xlu1 %796 }
 0x479   :  { %v798_v43 = vmul.f32 0.03125, %v797_v42 }
 0x47b   :  { %v799_v44 = vsub.f32 %v794_v39, %v798_v43 }
 0x47c   :  { %v610_v45 = vpop.xlane.xlu1 %609 }
 0x47d   :  { %v611_v46 = vmul.f32 0.03125, %v610_v45  ;;  %v800_v47 = vmul.f32 %v799_v44, %v799_v44 }
 0x47f   :  { %v612_v48 = vadd.f32 1e-05, %v611_v46  ;;  %v801_v49 = vsel %vm600_vm12, %v800_v47, 0.0 }
 0x480   :  { %802 = vadd.xlane.f32.xlu0 %v801_v49 }
 0x481   :  { %1337 = vrsqrt.f32 %v612_v48 }
 0x48b   :  { %v1338_v52 = vpop.eup %1337 }
 0x48c   :  { %v614_v53 = vmul.f32 %v1338_v52, %v606_v36 }
 0x48e   :  { %v619_v55 = vmul.f32 %v618_v51, %v614_v53 }
 0x490   :  { %v624_v56 = vadd.f32 %v623_v54, %v619_v55 }
 0x492   :  { %1255 = vmatpush3.xpose.msk.msra.mxu0 %vm308_vm10, %v624_v56 }
 0x50d   :  { %v803_v15 = vpop.xlane.xlu0 %802 }
 0x50e   :  { %v804_v57 = vmul.f32 0.03125, %v803_v15 }
 0x510   :  { %v805_v58 = vadd.f32 1e-05, %v804_v57 }
 0x512   :  { %1339 = vrsqrt.f32 %v805_v58 }
 0x51c   :  { %v1340_v61 = vpop.eup %1339 }
 0x51d   :  { %v807_v62 = vmul.f32 %v1340_v61, %v799_v44 }
 0x51f   :  { %v812_v4 = vmul.f32 %v811_v16, %v807_v62 }
 0x521   :  { %v817_v5 = vadd.f32 %v816_v63, %v812_v4 }
 0x523   :  { %1257 = vmatmul.mubr.msk.f32.vlgmr.msra.gmra.mrb[6].mxu0 %vm308_vm10, %v817_v5  ;;  %1260 = vmatpush3.xpose.msk.msra.mxu1 %vm308_vm10, %v817_v5 }
 0x524   :  { %1264 = vmatprep.subr.mxu1 %v1467_v1 }
 0x526   :  { %1262 = vmatmul.mubr.msk.f32.vlgmr.msra.gmra.mrb[6].mxu1 %vm308_vm10, %v817_v5 }
 0x527   :  { %1265 = vmatpush3.xpose.msk.msra.mxu1 %vm308_vm10, %v624_v56  ;;  %1266 = vmatprep.mubr.msk.f32.mxu1 %vm1466_vm0, %v1467_v1 }
 0x52e   :  { %1267 = vmatmul.mubr.msk.f32.vlgmr.msra.gmra.mrb[6].mxu1 %vm308_vm10, %v624_v56 }
 0x5f6   :  { %v890_v3 = vpop.f32.mrb[6].mxu0 }
 0x5f7   :  { %v1258_v9 = vpop.f32.mrb[7].mxu0  ;;  %v1047_v33 = vsel %vm1035_vm13, %v890_v3, -inf }
 0x5f8   :  { %1048 = vmax.xlane.f32.xlu0 %v1047_v33  ;;  %v1059_v6 = vrot.slane %v1047_v33, 4 }
 0x5fa   :  { %v1060_v7 = vmax.f32 %v1047_v33, %v1059_v6 }
 0x5fc   :  { %v1061_v8 = vrot.slane %v1060_v7, 2 }
 0x5fe   :  { %v1062_v10 = vmax.f32 %v1060_v7, %v1061_v8 }
 0x600   :  { %v1063_v11 = vrot.slane %v1062_v10, 1 }
 0x601   :  { %v1030_v12 = vpop.f32.mrb[6].mxu1 }
 0x602   :  { %v1064_v13 = vmax.f32 %v1062_v10, %v1063_v11  ;;  %v1034_v17 = vmul.f32 0.5, %v1030_v12  ;;  %v1268_v18 = vpop.f32.mrb[7].mxu1 }
 0x604   :  { %v1036_v19 = vsel %vm1035_vm13, %v1034_v17, -inf  ;;  %v1065_v1 = vsub.f32 %v890_v3, %v1064_v13 }
 0x605   :  { %1037 = vmax.xlane.f32.xlu1 %v1036_v19 }
 0x606   :  { %v1066_v14 = vmul.f32 1.442695, %v1065_v1 }
 0x685   :  { %v1049_v20 = vpop.xlane.xlu0 %1048 }
 0x686   :  { %v1050_v21 = vsub.f32 %v890_v3, %v1049_v20 }
 0x688   :  { %v1051_v22 = vmul.f32 1.442695, %v1050_v21 }
 0x68a   :  { %1341 = vpow2.f32 %v1051_v22 }
 0x692   :  { %v1038_v0 = vpop.xlane.xlu1 %1037 }
 0x693   :  { %v1039_v23 = vsub.f32 %v1034_v17, %v1038_v0 }
 0x694   :  { %v1342_v24 = vpop.eup %1341 }
 0x695   :  { %v1040_v25 = vmul.f32 1.442695, %v1039_v23  ;;  %v1053_v26 = vsel %vm1035_vm13, %v1342_v24, 0.0 }
 0x696   :  { %1054 = vadd.xlane.f32.xlu0 %v1053_v26 }
 0x697   :  { %1343 = vpow2.f32 %v1040_v25 }
 0x698   :  { %1345 = vpow2.f32 %v1066_v14 }
 0x6a1   :  { %v1344_v27 = vpop.eup %1343 }
 0x6a2   :  { %v1042_v28 = vsel %vm1035_vm13, %v1344_v27, 0.0  ;;  %v1346_v29 = vpop.eup %1345 }
 0x6a3   :  { %1043 = vadd.xlane.f32.xlu1 %v1042_v28  ;;  %v1068_v30 = vsel %vm1035_vm13, %v1346_v29, 0.0 }
 0x6a4   :  { %v1069_v31 = vrot.slane %v1068_v30, 4 }
 0x6a6   :  { %v1070_v32 = vadd.f32 %v1069_v31, %v1068_v30 }
 0x6a8   :  { %v1071_v34 = vrot.slane %v1070_v32, 2 }
 0x6aa   :  { %v1072_v35 = vadd.f32 %v1071_v34, %v1070_v32 }
 0x6ac   :  { %v1073_v36 = vrot.slane %v1072_v35, 1 }
 0x6ae   :  { %v1074_v38 = vadd.f32 %v1073_v36, %v1072_v35 }
 0x723   :  { %v1055_v37 = vpop.xlane.xlu0 %1054 }
 0x724   :  { %1347 = vlog2.f32 %v1055_v37 }
 0x725   :  { %1349 = vlog2.f32 %v1074_v38 }
 0x72e   :  { %v1348_v40 = vpop.eup %1347 }
 0x72f   :  { %v1350_v41 = vpop.eup %1349  ;;  %v1057_v2 = vmul.f32 0.6931472, %v1348_v40 }
 0x730   :  { %v1044_v39 = vpop.xlane.xlu1 %1043  ;;  %v1076_v42 = vmul.f32 0.6931472, %v1350_v41 }
 0x731   :  { %1351 = vrcp.f32 %v1044_v39  ;;  %v1058_v43 = vsub.f32 %v1050_v21, %v1057_v2 }
 0x732   :  { %v1077_v44 = vsub.f32 %v1065_v1, %v1076_v42 }
 0x734   :  { %v1078_v47 = vadd.f32 %v1077_v44, %v1058_v43 }
 0x73b   :  { %v1352_v45 = vpop.eup %1351 }
 0x73c   :  { %v1046_v46 = vmul.f32 %v1352_v45, %v1344_v27 }
 0x73e   :  { %v1079_v48 = vmul.f32 %v1078_v47, %v1046_v46 }
 0x740   :  { %v1080_v49 = vsel %vm1035_vm13, %v1079_v48, 0.0 }
 0x741   :  { %1081 = vadd.xlane.f32.xlu0 %v1080_v49 }
 0x7ce   :  { %v1082_v50 = vpop.xlane.xlu0 %1081 }
 0x7cf   :  { %v1083_v51 = vrot.slane %v1082_v50, 4 }
 0x7d1   :  { %v1084_v52 = vadd.f32 %v1083_v51, %v1082_v50 }
 0x7d3   :  { %v1085_v53 = vrot.slane %v1084_v52, 2 }
 0x7d5   :  { %v1086_v54 = vadd.f32 %v1085_v53, %v1084_v52 }
 0x7d7   :  { %v1087_v55 = vrot.slane %v1086_v54, 1 }
 0x7d9   :  { %v1088_v56 = vadd.f32 %v1087_v55, %v1086_v54 }
 0x7db   :  { %1319 = vpush %v1088_v56 }
 0x80c   :  { %s1320_s9 = spop %1319 }
 0x80d   :  { %s1090_s29 = ssub.f32 0.0, %s1320_s9 }
 0x80f   :  { %s1093_s30 = smul.f32 0.125, %s1090_s29 }
 0x811   :  { %1095 = sst [smem:[#allocation10]] %s1093_s30 }
 0x812   :  { %1450 = shalt.err (!%p1447_p6)
}
 0x813   :  { %s1468_s19 = smov [#allocation10]  }
 0x814   :  { %1103 = dma.smem_to_hbm %s1468_s19, 16, %s1819_s10, [#allocation4]  }
 0x815   :  { %1457 = dma.done.wait [#allocation4], 16  }
 0x816   :  { %1458 = vsyncadd [#allocation4], 4294967280 }
 0x817   :  { %1107 = sfence }
 0x818   :  { %1108 = vsyncpa [#allocation3], 1 }
 0x819   :  { %1109 = vsyncpa [#allocation6], 1 }
 0x81a   :  { %1110 = vsyncpa [#allocation9], 1 }
 0x81b   :  { %1111 = vsyncpa [#allocation4], 1 }

</bundles_post_ra>
